<compile_context>
chip_gen: v6e
topology: v6e:2x2x1
jax: 0.10.0
libtpu: 0.0.40
codegen_flags: <defaults>
</compile_context>

<pallas_src>
import functools

import jax
import jax.numpy as jnp
from jax.experimental import pallas as pl
from jax.experimental.pallas import tpu as pltpu

LANE = 128        # vreg lane width: pad feature dims to a multiple of this
SUBLANE = 8       # f32 sublane count: pad batch rows to a multiple of this
MAX_TILE_B = 2048  # rows per grid step cap (keeps per-tile VMEM ~2 MiB at Dpad=128)


def _round_up(n, m):
    return (n + m - 1) // m * m


def _fused_mlp_kernel(x_ref, w_ref, b_ref, o_ref):
    """Apply all layers of sigmoid(x @ W_i + b_i) in one kernel invocation.

    x_ref: [TB, Dpad]        activations (zero padded beyond real features)
    w_ref: [L, Dpad, Dpad]   stacked weights, zero padded outside [d_in_i, d_out_i]
    b_ref: [L, 1, Dpad]      stacked biases, zero padded outside [:, :d_out_i]
    o_ref: [TB, Dpad]        final activation (real values in first out_dim lanes)
    """
    n_layers = w_ref.shape[0]
    x = x_ref[...]
    for i in range(n_layers):  # static unroll: layer count is tiny
        y = jnp.dot(x, w_ref[i], preferred_element_type=jnp.float32)
        y = y + b_ref[i]                 # [1, Dpad] broadcast over rows
        x = jax.nn.sigmoid(y)            # padded lanes become 0.5 but hit zero
                                         # weight rows in the next layer
    o_ref[...] = x.astype(o_ref.dtype)


def pack_params(params, dtype=jnp.float32):
    """Zero-pad + stack layer params ONCE (outside the per-call forward).

    params: list of (w [d_in_i, d_out_i], b [1, d_out_i]).
    Returns (w_stack [L,Dpad,Dpad], b_stack [L,1,Dpad], dims) where dims is a
    static tuple of the real (d_in, d_out) per layer (used for CostEstimate
    and the output slice).  Pass dtype=jnp.bfloat16 to halve weight VMEM/HBM
    traffic (accumulation stays f32 via preferred_element_type).
    """
    dims = tuple((int(w.shape[0]), int(w.shape[1])) for w, _ in params)
    d_max = max(max(s) for s in dims)
    d_pad = _round_up(max(d_max, LANE), LANE)
    w_stack = jnp.stack([
        jnp.pad(w.astype(dtype),
                ((0, d_pad - w.shape[0]), (0, d_pad - w.shape[1])))
        for w, _ in params])
    b_stack = jnp.stack([
        jnp.pad(b.reshape(1, -1).astype(dtype),
                ((0, 0), (0, d_pad - b.shape[-1])))
        for _, b in params])
    return w_stack, b_stack, dims


@functools.partial(jax.jit, static_argnames=("dims",))
def multi_my_model_forward(x, w_stack, b_stack, *, dims):
    """Forward pass of MultiMyModel via one fused Pallas kernel.

    x: [B, in_dim]; w_stack/b_stack: pre-packed by pack_params(); dims: static
    tuple of real (d_in, d_out) per layer.
    """
    B, in_dim = x.shape
    n_layers, d_pad, _ = w_stack.shape
    assert dims[0][0] == in_dim, "layer-0 input dim mismatch"
    out_dim = dims[-1][1]
    dtype = x.dtype

    # ---- adaptive batch tiling ------------------------------------------
    b_pad = _round_up(max(B, SUBLANE), SUBLANE)
    if b_pad <= 256:
        # Tiny batch: one block, no wasted rows, negligible per-step overhead.
        grid_b, tile_b = 1, b_pad
    else:
        # Split evenly into >=2 parallel steps (engages both v7x TCs); cap the
        # tile so very large batches pipeline instead of blowing up VMEM.
        grid_b = max(2, pl.cdiv(b_pad, MAX_TILE_B))
        tile_b = _round_up(pl.cdiv(b_pad, grid_b), SUBLANE)
        grid_b = pl.cdiv(b_pad, tile_b)
    b_full = grid_b * tile_b  # waste is < grid_b * SUBLANE rows, never a full tile

    # Single lax.pad op (review: replace zeros().at[].set()).
    x_pad = jnp.pad(x, ((0, b_full - B), (0, d_pad - in_dim)))

    # ---- advisory cost from REAL dims, not padded ones -------------------
    itemsize = jnp.dtype(dtype).itemsize
    w_itemsize = jnp.dtype(w_stack.dtype).itemsize
    cost = pl.CostEstimate(
        flops=2 * B * sum(di * do for di, do in dims),
        transcendentals=B * sum(do for _, do in dims),   # exp in sigmoid
        bytes_accessed=itemsize * (B * in_dim + B * out_dim)
        + w_itemsize * (w_stack.size + b_stack.size),
    )

    # Explicit VMEM budget: double-buffered x/out tiles + resident weight stack.
    vmem_need = (2 * itemsize * (2 * tile_b * d_pad)
                 + 2 * w_itemsize * (w_stack.size + b_stack.size))
    vmem_limit = int(max(vmem_need + (4 << 20), 16 << 20))

    # TODO(synk): add a K/N-tiled fallback (contraction grid axis with
    # "arbitrary" semantics + f32 VMEM accumulator) once L*Dpad^2 no longer
    # fits comfortably in scoped VMEM (v7x is the tightest at 64 MiB physical).

    out_pad = pl.pallas_call(
        _fused_mlp_kernel,
        out_shape=jax.ShapeDtypeStruct((b_full, d_pad), dtype),
        grid=(grid_b,),
        in_specs=[
            pl.BlockSpec((tile_b, d_pad), lambda i: (i, 0)),
            # Constant index maps -> weights/biases stay resident; no re-DMA
            # across batch tiles.
            pl.BlockSpec((n_layers, d_pad, d_pad), lambda i: (0, 0, 0)),
            pl.BlockSpec((n_layers, 1, d_pad), lambda i: (0, 0, 0)),
        ],
        out_specs=pl.BlockSpec((tile_b, d_pad), lambda i: (i, 0)),
        compiler_params=pltpu.CompilerParams(
            dimension_semantics=("parallel",),   # shard batch tiles across TCs
            vmem_limit_bytes=vmem_limit,
        ),
        cost_estimate=cost,
    )(x_pad, w_stack, b_stack)

    # Rows are exact whenever B % 8 == 0, so only the cheap lane slice remains;
    # done inside jit so XLA can fuse it into the consumer.
    return out_pad[:B, :out_dim]


def init_multi_my_model(key, in_dim, out_dim, n_layers, dtype=jnp.float32):
    """Deterministic params matching MultiMyModel.__init__ layer shapes.

    Each layer i is Linear(d_in_i, d_out_i) with (d_in, d_out) swapping every
    layer, like the PyTorch module. Weights stored as [d_in, d_out] == W.T.
    """
    params = []
    d_in, d_out = in_dim, out_dim
    for _ in range(n_layers):
        key, kw, kb = jax.random.split(key, 3)
        bound = 1.0 / jnp.sqrt(jnp.float32(d_in))
        w = jax.random.uniform(kw, (d_in, d_out), dtype, -bound, bound)
        b = jax.random.uniform(kb, (1, d_out), dtype, -bound, bound)
        params.append((w, b))
        d_in, d_out = d_out, d_in
    return params


def _reference_forward(x, params):
    for w, b in params:
        x = jax.nn.sigmoid(x @ w + b)
    return x


if __name__ == "__main__":
    key = jax.random.PRNGKey(0)
    k_params, k_x, k_x_big = jax.random.split(key, 3)

    batch = 8
    in_dim = 32
    out_dim = 16
    n_layers = 3  # dims alternate: 32->16, 16->32, 32->16

    params = init_multi_my_model(k_params, in_dim, out_dim, n_layers)

    # Pack once at init (review: no per-call repacking / dynamic-update-slices).
    w_stack, b_stack, dims = pack_params(params)

    # Small-batch path: one block, grid=(1,).
    x = jax.random.uniform(k_x, (batch, in_dim), jnp.float32)  # torch.rand analog
    out = jax.block_until_ready(
        multi_my_model_forward(x, w_stack, b_stack, dims=dims))
    ref = _reference_forward(x, params)
    expected_out_dim = out_dim if n_layers % 2 == 1 else in_dim
    assert out.shape == (batch, expected_out_dim)
    assert jnp.allclose(out, ref, atol=1e-5, rtol=1e-5)

    # Larger batch: exercises the multi-step "parallel" batch grid (2 tiles,
    # both TCs on v7x; weights stay resident).
    big_batch = 2048
    x_big = jax.random.uniform(k_x_big, (big_batch, in_dim), jnp.float32)
    out_big = jax.block_until_ready(
        multi_my_model_forward(x_big, w_stack, b_stack, dims=dims))
    ref_big = _reference_forward(x_big, params)
    assert out_big.shape == (big_batch, expected_out_dim)
    assert jnp.allclose(out_big, ref_big, atol=1e-5, rtol=1e-5)

    print("KERNEL_OK")
</pallas_src>

<mosaic_0001>
module attributes {stable_mosaic.version = 11 : i64} {
  func.func @_fused_mlp_kernel(%arg0: i32, %arg1: memref<8x128xf32, #tpu.memory_space<vmem>>, %arg2: memref<3x128x128xf32, #tpu.memory_space<vmem>>, %arg3: memref<3x1x128xf32, #tpu.memory_space<vmem>>, %arg4: memref<8x128xf32, #tpu.memory_space<vmem>>) attributes {dimension_semantics = [#tpu.dimension_semantics<parallel>], iteration_bounds = array<i64: 1>, scalar_prefetch = 0 : i64, scratch_operands = 0 : i64, tpu.core_type = #tpu.core_type<tc>, window_params = [{transform_indices = @transform_0, window_bounds = array<i64: 8, 128>}, {pipeline_mode = #tpu.pipeline_mode<synchronous>, transform_indices = @transform_1, window_bounds = array<i64: 3, 128, 128>}, {pipeline_mode = #tpu.pipeline_mode<synchronous>, transform_indices = @transform_2, window_bounds = array<i64: 3, 1, 128>}, {transform_indices = @transform_3, window_bounds = array<i64: 8, 128>}]} {
    %c0 = arith.constant 0 : index
    %c0_0 = arith.constant 0 : index
    %0 = vector.load %arg1[%c0, %c0_0] : memref<8x128xf32, #tpu.memory_space<vmem>>, vector<8x128xf32>
    %c0_1 = arith.constant 0 : index
    %c0_2 = arith.constant 0 : index
    %c0_3 = arith.constant 0 : index
    %1 = vector.load %arg2[%c0_1, %c0_2, %c0_3] : memref<3x128x128xf32, #tpu.memory_space<vmem>>, vector<1x128x128xf32>
    %2 = vector.shape_cast %1 : vector<1x128x128xf32> to vector<128x128xf32>
    %cst = arith.constant dense<0.000000e+00> : vector<8x128xf32>
    %3 = tpu.matmul %0, %2, %cst {dimension_numbers = #tpu.dot_dimension_numbers<[1], [0], [0], [1], [0, 0, 1, 1], [], []>} : vector<8x128xf32>, vector<128x128xf32>, vector<8x128xf32> -> vector<8x128xf32>
    %c0_4 = arith.constant 0 : index
    %c0_5 = arith.constant 0 : index
    %c0_6 = arith.constant 0 : index
    %4 = vector.load %arg3[%c0_4, %c0_5, %c0_6] : memref<3x1x128xf32, #tpu.memory_space<vmem>>, vector<1x1x128xf32>
    %5 = vector.shape_cast %4 : vector<1x1x128xf32> to vector<1x128xf32>
    %6 = vector.broadcast %5 : vector<1x128xf32> to vector<8x128xf32>
    %7 = arith.addf %3, %6 : vector<8x128xf32>
    %8 = arith.negf %7 : vector<8x128xf32>
    %9 = math.exp %8 : vector<8x128xf32>
    %cst_7 = arith.constant 1.000000e+00 : f32
    %10 = vector.broadcast %cst_7 : f32 to vector<8x128xf32>
    %11 = arith.addf %10, %9 : vector<8x128xf32>
    %12 = arith.divf %10, %11 : vector<8x128xf32>
    %c1 = arith.constant 1 : index
    %c0_8 = arith.constant 0 : index
    %c0_9 = arith.constant 0 : index
    %13 = vector.load %arg2[%c1, %c0_8, %c0_9] : memref<3x128x128xf32, #tpu.memory_space<vmem>>, vector<1x128x128xf32>
    %14 = vector.shape_cast %13 : vector<1x128x128xf32> to vector<128x128xf32>
    %cst_10 = arith.constant dense<0.000000e+00> : vector<8x128xf32>
    %15 = tpu.matmul %12, %14, %cst_10 {dimension_numbers = #tpu.dot_dimension_numbers<[1], [0], [0], [1], [0, 0, 1, 1], [], []>} : vector<8x128xf32>, vector<128x128xf32>, vector<8x128xf32> -> vector<8x128xf32>
    %c1_11 = arith.constant 1 : index
    %c0_12 = arith.constant 0 : index
    %c0_13 = arith.constant 0 : index
    %16 = vector.load %arg3[%c1_11, %c0_12, %c0_13] : memref<3x1x128xf32, #tpu.memory_space<vmem>>, vector<1x1x128xf32>
    %17 = vector.shape_cast %16 : vector<1x1x128xf32> to vector<1x128xf32>
    %18 = vector.broadcast %17 : vector<1x128xf32> to vector<8x128xf32>
    %19 = arith.addf %15, %18 : vector<8x128xf32>
    %20 = arith.negf %19 : vector<8x128xf32>
    %21 = math.exp %20 : vector<8x128xf32>
    %cst_14 = arith.constant 1.000000e+00 : f32
    %22 = vector.broadcast %cst_14 : f32 to vector<8x128xf32>
    %23 = arith.addf %22, %21 : vector<8x128xf32>
    %24 = arith.divf %22, %23 : vector<8x128xf32>
    %c2 = arith.constant 2 : index
    %c0_15 = arith.constant 0 : index
    %c0_16 = arith.constant 0 : index
    %25 = vector.load %arg2[%c2, %c0_15, %c0_16] : memref<3x128x128xf32, #tpu.memory_space<vmem>>, vector<1x128x128xf32>
    %26 = vector.shape_cast %25 : vector<1x128x128xf32> to vector<128x128xf32>
    %cst_17 = arith.constant dense<0.000000e+00> : vector<8x128xf32>
    %27 = tpu.matmul %24, %26, %cst_17 {dimension_numbers = #tpu.dot_dimension_numbers<[1], [0], [0], [1], [0, 0, 1, 1], [], []>} : vector<8x128xf32>, vector<128x128xf32>, vector<8x128xf32> -> vector<8x128xf32>
    %c2_18 = arith.constant 2 : index
    %c0_19 = arith.constant 0 : index
    %c0_20 = arith.constant 0 : index
    %28 = vector.load %arg3[%c2_18, %c0_19, %c0_20] : memref<3x1x128xf32, #tpu.memory_space<vmem>>, vector<1x1x128xf32>
    %29 = vector.shape_cast %28 : vector<1x1x128xf32> to vector<1x128xf32>
    %30 = vector.broadcast %29 : vector<1x128xf32> to vector<8x128xf32>
    %31 = arith.addf %27, %30 : vector<8x128xf32>
    %32 = arith.negf %31 : vector<8x128xf32>
    %33 = math.exp %32 : vector<8x128xf32>
    %cst_21 = arith.constant 1.000000e+00 : f32
    %34 = vector.broadcast %cst_21 : f32 to vector<8x128xf32>
    %35 = arith.addf %34, %33 : vector<8x128xf32>
    %36 = arith.divf %34, %35 : vector<8x128xf32>
    %c0_22 = arith.constant 0 : index
    %c0_23 = arith.constant 0 : index
    %37 = vector.load %arg4[%c0_22, %c0_23] : memref<8x128xf32, #tpu.memory_space<vmem>>, vector<8x128xf32>
    tpu.vector_store %arg4[%c0_22, %c0_23], %36 {strides = array<i32>} : memref<8x128xf32, #tpu.memory_space<vmem>>, vector<8x128xf32>,
    return
  }
  func.func @transform_0(%arg0: i32) -> (i32, i32) {
    %c0_i32 = arith.constant 0 : i32
    %c0_i32_0 = arith.constant 0 : i32
    return %arg0, %c0_i32 : i32, i32
  }
  func.func @transform_1(%arg0: i32) -> (i32, i32, i32) {
    %c0_i32 = arith.constant 0 : i32
    %c0_i32_0 = arith.constant 0 : i32
    %c0_i32_1 = arith.constant 0 : i32
    %c0_i32_2 = arith.constant 0 : i32
    return %c0_i32, %c0_i32_0, %c0_i32_1 : i32, i32, i32
  }
  func.func @transform_2(%arg0: i32) -> (i32, i32, i32) {
    %c0_i32 = arith.constant 0 : i32
    %c0_i32_0 = arith.constant 0 : i32
    %c0_i32_1 = arith.constant 0 : i32
    %c0_i32_2 = arith.constant 0 : i32
    return %c0_i32, %c0_i32_0, %c0_i32_1 : i32, i32, i32
  }
  func.func @transform_3(%arg0: i32) -> (i32, i32) {
    %c0_i32 = arith.constant 0 : i32
    %c0_i32_0 = arith.constant 0 : i32
    return %arg0, %c0_i32 : i32, i32
  }
}

</mosaic_0001>

<bundles_post_ra>
// kernel: multi_my_model_forward.1
= control target key start
LH: loop header
LB: loop body
LE: loop exit
PB: predicated region body
PF: predicated region fallthrough
CT: control target
= control target key end

     0   :  { %8 = vsyncpa [#allocation3], 0  ;;  %s671_s0 = inlined_call_operand.vmem [shape: f32[8,128], index: 0, kind: input, shape index: {}]   ;;  %s672_s1 = inlined_call_operand.hbm [shape: f32[3,128,128], index: 1, kind: input, shape index: {}]   ;;  %s673_s2 = inlined_call_operand.vmem [shape: f32[3,1,128], index: 2, kind: input, shape index: {}]   ;;  %s674_s3 = inlined_call_operand.hbm [shape: f32[8,128], index: 3, kind: output, shape index: {}]  }
   0x1   :  { %9 = vsyncpa [#allocation4], 0  ;;  %s573_s12 = smov [#allocation2]  }
   0x2   :  { %s17_s13 = sshll.u32 %s573_s12, 4  ;;  %s18_s13 = int_to_ptr.vmem [resolvable:$true] %s17_s13 }
   0x3   :  { %s537_s14 = scalar_lea.vmem %s18_s13, 6144  ;;  %p542_p1 = scmp.lt.s32.totalorder %s18_s13, %s18_s13 }
   0x4   :  { %p538_p0 = scmp.ne.s32.totalorder %s18_s13, %s537_s14  ;;  %p543_p2 = scmp.lt.s32.totalorder %s537_s14, %s537_s14 }
   0x6   :  { %p544_p3 = por %p543_p2, %p542_p1 }
   0x8   :  { %p545_p4 = pnand %p544_p3, %p538_p0 }
   0xa   :  { %548 = shalt.err (!%p545_p4)
}
   0xb   :  { %s574_s15 = smov 128   ;;  %s575_s16 = smov 8  }
   0xc   :  { %23 = dma.hbm_to_vmem [thread:$0]  %s672_s1, 6144, %s18_s13, [#allocation3], %s574_s15, %s574_s15, %s575_s16  }
   0xd   :  { %569 = dma.done.wait [#allocation3], 6144  }
   0xe   :  { %570 = vsyncadd [#allocation3], 4294961152  ;;  %v576_v0 = vmov 0.0   ;;  %vm577_vm0 = vmmov 0   ;;  %v45_v1 = vld [vmem:[#allocation2 + $0x78] sm:$0xff]  ;;  %v44_v2 = vld [vmem:[#allocation2 + $0x70] sm:$0xff] }
   0xf   :  { %406 = vmatprep.subr.mxu0 %v576_v0  ;;  %438 = vmatprep.mubr.msk.f32.mxu0 %vm577_vm0, %v576_v0  ;;  %v43_v3 = vld [vmem:[#allocation2 + $0x68] sm:$0xff]  ;;  %v42_v4 = vld [vmem:[#allocation2 + $0x60] sm:$0xff]  ;;  %v41_v5 = vld [vmem:[#allocation2 + $0x58] sm:$0xff]  ;;  %s578_s25 = smov [#allocation5]  }
  0x10   :  { %441 = vmatprep.subr.mxu1 %v576_v0  ;;  %473 = vmatprep.mubr.msk.f32.mxu1 %vm577_vm0, %v576_v0  ;;  %v40_v6 = vld [vmem:[#allocation2 + $0x50] sm:$0xff]  ;;  %v39_v7 = vld [vmem:[#allocation2 + $0x48] sm:$0xff]  ;;  %v38_v8 = vld [vmem:[#allocation2 + $0x40] sm:$0xff]  ;;  %s338_s26 = sshll.u32 %s578_s25, 4  ;;  %s339_s26 = int_to_ptr.vmem [resolvable:$true] %s338_s26 }
  0x11   :  { %407 = vmatpush3.msra.mxu0 %v45_v1  ;;  %v37_v9 = vld [vmem:[#allocation2 + $0x38] sm:$0xff]  ;;  %v36_v10 = vld [vmem:[#allocation2 + $0x30] sm:$0xff]  ;;  %v35_v11 = vld [vmem:[#allocation2 + $0x28] sm:$0xff]  ;;  %s549_s27 = scalar_lea.vmem %s339_s26, 128  ;;  %p554_p6 = scmp.lt.s32.totalorder %s339_s26, %s339_s26 }
  0x12   :  { %408 = vmatprep.subr.mxu0 %v576_v0  ;;  %v34_v12 = vld [vmem:[#allocation2 + $0x20] sm:$0xff]  ;;  %v33_v13 = vld [vmem:[#allocation2 + $0x18] sm:$0xff]  ;;  %v32_v14 = vld [vmem:[#allocation2 + $0x10] sm:$0xff]  ;;  %p550_p5 = scmp.ne.s32.totalorder %s339_s26, %s549_s27  ;;  %p555_p7 = scmp.lt.s32.totalorder %s549_s27, %s549_s27 }
  0x13   :  { %409 = vmatpush3.msra.mxu0 %v44_v2  ;;  %v31_v15 = vld [vmem:[#allocation2 + $0x8] sm:$0xff]  ;;  %v30_v16 = vld [vmem:[#allocation2] sm:$0xff]  ;;  %v145_v18 = vld [vmem:[#allocation2 + $0xf8] sm:$0xff] }
  0x14   :  { %410 = vmatprep.subr.mxu0 %v576_v0  ;;  %v29_v17 = vld [vmem:[%s671_s0] sm:$0xff]  ;;  %442 = vmatpush3.msra.mxu1 %v145_v18  ;;  %v144_v19 = vld [vmem:[#allocation2 + $0xf0] sm:$0xff]  ;;  %v143_v20 = vld [vmem:[#allocation2 + $0xe8] sm:$0xff]  ;;  %p556_p8 = por %p555_p7, %p554_p6 }
  0x15   :  { %411 = vmatpush3.msra.mxu0 %v43_v3  ;;  %443 = vmatprep.subr.mxu1 %v576_v0  ;;  %v142_v21 = vld [vmem:[#allocation2 + $0xe0] sm:$0xff]  ;;  %v141_v22 = vld [vmem:[#allocation2 + $0xd8] sm:$0xff]  ;;  %v140_v23 = vld [vmem:[#allocation2 + $0xd0] sm:$0xff] }
  0x16   :  { %412 = vmatprep.subr.mxu0 %v576_v0  ;;  %444 = vmatpush3.msra.mxu1 %v144_v19  ;;  %v139_v24 = vld [vmem:[#allocation2 + $0xc8] sm:$0xff]  ;;  %v138_v25 = vld [vmem:[#allocation2 + $0xc0] sm:$0xff]  ;;  %v137_v26 = vld [vmem:[#allocation2 + $0xb8] sm:$0xff]  ;;  %p557_p9 = pnand %p556_p8, %p550_p5 }
  0x17   :  { %413 = vmatpush3.msra.mxu0 %v42_v4  ;;  %445 = vmatprep.subr.mxu1 %v576_v0  ;;  %v136_v27 = vld [vmem:[#allocation2 + $0xb0] sm:$0xff]  ;;  %v135_v28 = vld [vmem:[#allocation2 + $0xa8] sm:$0xff]  ;;  %v134_v29 = vld [vmem:[#allocation2 + $0xa0] sm:$0xff] }
  0x18   :  { %414 = vmatprep.subr.mxu0 %v576_v0  ;;  %446 = vmatpush3.msra.mxu1 %v143_v20  ;;  %v133_v30 = vld [vmem:[#allocation2 + $0x98] sm:$0xff]  ;;  %v132_v31 = vld [vmem:[#allocation2 + $0x90] sm:$0xff]  ;;  %v131_v32 = vld [vmem:[#allocation2 + $0x88] sm:$0xff] }
  0x19   :  { %415 = vmatpush3.msra.mxu0 %v41_v5  ;;  %447 = vmatprep.subr.mxu1 %v576_v0  ;;  %v130_v33 = vld [vmem:[#allocation2 + $0x80] sm:$0xff]  ;;  %v246_v42 = vld [vmem:[#allocation2 + $0x178] sm:$0xff]  ;;  %v245_v43 = vld [vmem:[#allocation2 + $0x170] sm:$0xff] }
  0x1a   :  { %416 = vmatprep.subr.mxu0 %v576_v0  ;;  %448 = vmatpush3.msra.mxu1 %v142_v21  ;;  %v347_v34 = vld [vmem:[%s673_s2] ss:$0 sm:$0xff]  ;;  %v244_v44 = vld [vmem:[#allocation2 + $0x168] sm:$0xff]  ;;  %v242_v46 = vld [vmem:[#allocation2 + $0x158] sm:$0xff] }
  0x1b   :  { %417 = vmatpush3.msra.mxu0 %v40_v6  ;;  %449 = vmatprep.subr.mxu1 %v576_v0  ;;  %v243_v45 = vld [vmem:[#allocation2 + $0x160] sm:$0xff]  ;;  %v241_v47 = vld [vmem:[#allocation2 + $0x150] sm:$0xff]  ;;  %v240_v48 = vld [vmem:[#allocation2 + $0x148] sm:$0xff] }
  0x1c   :  { %418 = vmatprep.subr.mxu0 %v576_v0  ;;  %450 = vmatpush3.msra.mxu1 %v141_v22  ;;  %v239_v49 = vld [vmem:[#allocation2 + $0x140] sm:$0xff]  ;;  %v238_v50 = vld [vmem:[#allocation2 + $0x138] sm:$0xff]  ;;  %v237_v51 = vld [vmem:[#allocation2 + $0x130] sm:$0xff] }
  0x1d   :  { %419 = vmatpush3.msra.mxu0 %v39_v7  ;;  %451 = vmatprep.subr.mxu1 %v576_v0  ;;  %v236_v52 = vld [vmem:[#allocation2 + $0x128] sm:$0xff]  ;;  %v235_v53 = vld [vmem:[#allocation2 + $0x120] sm:$0xff]  ;;  %v234_v54 = vld [vmem:[#allocation2 + $0x118] sm:$0xff] }
  0x1e   :  { %420 = vmatprep.subr.mxu0 %v576_v0  ;;  %452 = vmatpush3.msra.mxu1 %v140_v23  ;;  %v233_v55 = vld [vmem:[#allocation2 + $0x110] sm:$0xff]  ;;  %v232_v56 = vld [vmem:[#allocation2 + $0x108] sm:$0xff]  ;;  %v231_v57 = vld [vmem:[#allocation2 + $0x100] sm:$0xff] }
  0x1f   :  { %421 = vmatpush3.msra.mxu0 %v38_v8  ;;  %453 = vmatprep.subr.mxu1 %v576_v0  ;;  %v350_v58 = vld [vmem:[%s673_s2 + $0x1] ss:$0 sm:$0xff]  ;;  %v353_v3 = vld [vmem:[%s673_s2 + $0x2] ss:$0 sm:$0xff] }
  0x20   :  { %422 = vmatprep.subr.mxu0 %v576_v0  ;;  %454 = vmatpush3.msra.mxu1 %v139_v24 }
  0x21   :  { %423 = vmatpush3.msra.mxu0 %v37_v9  ;;  %455 = vmatprep.subr.mxu1 %v576_v0 }
  0x22   :  { %424 = vmatprep.subr.mxu0 %v576_v0  ;;  %456 = vmatpush3.msra.mxu1 %v138_v25 }
  0x23   :  { %425 = vmatpush3.msra.mxu0 %v36_v10  ;;  %457 = vmatprep.subr.mxu1 %v576_v0 }
  0x24   :  { %426 = vmatprep.subr.mxu0 %v576_v0  ;;  %458 = vmatpush3.msra.mxu1 %v137_v26 }
  0x25   :  { %427 = vmatpush3.msra.mxu0 %v35_v11  ;;  %459 = vmatprep.subr.mxu1 %v576_v0 }
  0x26   :  { %428 = vmatprep.subr.mxu0 %v576_v0  ;;  %460 = vmatpush3.msra.mxu1 %v136_v27 }
  0x27   :  { %429 = vmatpush3.msra.mxu0 %v34_v12  ;;  %461 = vmatprep.subr.mxu1 %v576_v0 }
  0x28   :  { %430 = vmatprep.subr.mxu0 %v576_v0  ;;  %462 = vmatpush3.msra.mxu1 %v135_v28 }
  0x29   :  { %431 = vmatpush3.msra.mxu0 %v33_v13  ;;  %463 = vmatprep.subr.mxu1 %v576_v0 }
  0x2a   :  { %432 = vmatprep.subr.mxu0 %v576_v0  ;;  %464 = vmatpush3.msra.mxu1 %v134_v29 }
  0x2b   :  { %433 = vmatpush3.msra.mxu0 %v32_v14  ;;  %465 = vmatprep.subr.mxu1 %v576_v0 }
  0x2c   :  { %434 = vmatprep.subr.mxu0 %v576_v0  ;;  %466 = vmatpush3.msra.mxu1 %v133_v30 }
  0x2d   :  { %435 = vmatpush3.msra.mxu0 %v31_v15  ;;  %467 = vmatprep.subr.mxu1 %v576_v0 }
  0x2e   :  { %436 = vmatprep.subr.mxu0 %v576_v0  ;;  %468 = vmatpush3.msra.mxu1 %v132_v31 }
  0x2f   :  { %437 = vmatpush3.msra.mxu0 %v30_v16  ;;  %469 = vmatprep.subr.mxu1 %v576_v0 }
  0x30   :  { %439 = vmatmul.mubr.f32.vlgmr.msra.gmra.mxu0 %v29_v17  ;;  %476 = vmatprep.subr.mxu0 %v576_v0 }
  0x31   :  { %508 = vmatprep.mubr.msk.f32.mxu0 %vm577_vm0, %v576_v0  ;;  %470 = vmatpush3.msra.mxu1 %v131_v32 }
  0x32   :  { %471 = vmatprep.subr.mxu1 %v576_v0  ;;  %477 = vmatpush3.msra.mxu0 %v246_v42 }
  0x33   :  { %472 = vmatpush3.msra.mxu1 %v130_v33  ;;  %478 = vmatprep.subr.mxu0 %v576_v0 }
  0x34   :  { %479 = vmatpush3.msra.mxu0 %v245_v43 }
  0x35   :  { %480 = vmatprep.subr.mxu0 %v576_v0 }
  0x36   :  { %481 = vmatpush3.msra.mxu0 %v244_v44 }
  0x37   :  { %482 = vmatprep.subr.mxu0 %v576_v0 }
  0x38   :  { %483 = vmatpush3.msra.mxu0 %v243_v45 }
  0x39   :  { %484 = vmatprep.subr.mxu0 %v576_v0 }
  0x3a   :  { %485 = vmatpush3.msra.mxu0 %v242_v46 }
  0x3b   :  { %486 = vmatprep.subr.mxu0 %v576_v0 }
  0x3c   :  { %487 = vmatpush3.msra.mxu0 %v241_v47 }
  0x3d   :  { %488 = vmatprep.subr.mxu0 %v576_v0 }
  0x3e   :  { %489 = vmatpush3.msra.mxu0 %v240_v48 }
  0x3f   :  { %490 = vmatprep.subr.mxu0 %v576_v0 }
  0x40   :  { %491 = vmatpush3.msra.mxu0 %v239_v49 }
  0x41   :  { %492 = vmatprep.subr.mxu0 %v576_v0 }
  0x42   :  { %493 = vmatpush3.msra.mxu0 %v238_v50 }
  0x43   :  { %494 = vmatprep.subr.mxu0 %v576_v0 }
  0x44   :  { %495 = vmatpush3.msra.mxu0 %v237_v51 }
  0x45   :  { %496 = vmatprep.subr.mxu0 %v576_v0 }
  0x46   :  { %497 = vmatpush3.msra.mxu0 %v236_v52 }
  0x47   :  { %498 = vmatprep.subr.mxu0 %v576_v0 }
  0x48   :  { %499 = vmatpush3.msra.mxu0 %v235_v53 }
  0x49   :  { %500 = vmatprep.subr.mxu0 %v576_v0 }
  0x4a   :  { %501 = vmatpush3.msra.mxu0 %v234_v54 }
  0x4b   :  { %502 = vmatprep.subr.mxu0 %v576_v0 }
  0x4c   :  { %503 = vmatpush3.msra.mxu0 %v233_v55 }
  0x4d   :  { %504 = vmatprep.subr.mxu0 %v576_v0 }
  0x4e   :  { %505 = vmatpush3.msra.mxu0 %v232_v56 }
  0x4f   :  { %506 = vmatprep.subr.mxu0 %v576_v0 }
  0x50   :  { %507 = vmatpush3.msra.mxu0 %v231_v57 }
  0xf0   :  { %v119_v35 = vpop.f32.mrf.mxu0 }
  0xf1   :  { %v120_v36 = vadd.f32 %v347_v34, %v119_v35 }
  0xf2   :  { %v440_v37 = vpop.f32.mrf.mxu0 }
  0xf3   :  { %v348_v38 = vmul.f32 -1.442695, %v120_v36 }
  0xf5   :  { %517 = vpow2.f32 %v348_v38 }
 0x102   :  { %v518_v39 = vpop.eup %517 }
 0x103   :  { %v126_v40 = vadd.f32 1.0, %v518_v39 }
 0x105   :  { %519 = vrcp.f32 %v126_v40 }
 0x112   :  { %v520_v41 = vpop.eup %519 }
 0x113   :  { %474 = vmatmul.mubr.f32.vlgmr.msra.gmra.mxu1 %v520_v41 }
 0x1d3   :  { %v220_v59 = vpop.f32.mrf.mxu1 }
 0x1d4   :  { %v221_v60 = vadd.f32 %v350_v58, %v220_v59 }
 0x1d5   :  { %v475_v61 = vpop.f32.mrf.mxu1 }
 0x1d6   :  { %v351_v62 = vmul.f32 -1.442695, %v221_v60 }
 0x1d8   :  { %521 = vpow2.f32 %v351_v62 }
 0x1e5   :  { %v522_v63 = vpop.eup %521 }
 0x1e6   :  { %v227_v1 = vadd.f32 1.0, %v522_v63 }
 0x1e8   :  { %523 = vrcp.f32 %v227_v1 }
 0x1f5   :  { %v524_v2 = vpop.eup %523 }
 0x1f6   :  { %509 = vmatmul.mubr.f32.vlgmr.msra.gmra.mxu0 %v524_v2 }
 0x2b6   :  { %v321_v0 = vpop.f32.mrf.mxu0 }
 0x2b7   :  { %v322_v4 = vadd.f32 %v353_v3, %v321_v0 }
 0x2b8   :  { %v510_v5 = vpop.f32.mrf.mxu0 }
 0x2b9   :  { %v354_v6 = vmul.f32 -1.442695, %v322_v4 }
 0x2bb   :  { %525 = vpow2.f32 %v354_v6 }
 0x2c8   :  { %v526_v7 = vpop.eup %525 }
 0x2c9   :  { %v328_v8 = vadd.f32 1.0, %v526_v7 }
 0x2cb   :  { %527 = vrcp.f32 %v328_v8 }
 0x2d8   :  { %v528_v9 = vpop.eup %527 }
 0x2d9   :  { %331 = vst [vmem:[#allocation5] sm:$0xff] %v528_v9 }
 0x2da   :  { %560 = shalt.err (!%p557_p9)
}
 0x2db   :  { %341 = dma.vmem_to_hbm [thread:$0]  %s339_s26, 128, %s674_s3, [#allocation4]  }
 0x2dc   :  { %571 = dma.done.wait [#allocation4], 128  }
 0x2dd   :  { %572 = vsyncadd [#allocation4], 4294967168 }
 0x2de   :  { %345 = vsyncpa [#allocation3], 1 }
 0x2df   :  { %346 = vsyncpa [#allocation4], 1 }

</bundles_post_ra>
